<compile_context>
chip_gen: v7x
topology: tpu7x:2x2x1
jax: 0.10.0
libtpu: 0.0.40
codegen_flags: <defaults>
</compile_context>

<pallas_src>
import math
from functools import partial

import jax
import jax.numpy as jnp
from jax.experimental import pallas as pl
from jax.experimental.pallas import tpu as pltpu


def _soft_iou_sums_kernel(p_ref, t_ref, inter_ref, psum_ref, tsum_ref,
                          *, tile_m, m_total, needs_mask):
    """Accumulate per-row sums of sigmoid(pred)*target, sigmoid(pred), target."""
    c = pl.program_id(1)  # column (reduction) grid index

    @pl.when(c == 0)
    def _init():
        inter_ref[...] = jnp.zeros_like(inter_ref)
        psum_ref[...] = jnp.zeros_like(psum_ref)
        tsum_ref[...] = jnp.zeros_like(tsum_ref)

    # Cast to f32 *inside* the kernel only (inputs stream at native width).
    p = jax.nn.sigmoid(p_ref[...].astype(jnp.float32))
    t = t_ref[...].astype(jnp.float32)

    if needs_mask:
        # Tail tile: mask columns past the true extent. sigmoid(garbage) != 0,
        # so padding must be zeroed before the reductions.
        col = c * tile_m + jax.lax.broadcasted_iota(jnp.int32, p.shape, 1)
        valid = col < m_total
        p = jnp.where(valid, p, 0.0)
        t = jnp.where(valid, t, 0.0)

    inter_ref[...] += jnp.sum(p * t, axis=1, keepdims=True)
    psum_ref[...] += jnp.sum(p, axis=1, keepdims=True)
    tsum_ref[...] += jnp.sum(t, axis=1, keepdims=True)


def soft_iou_loss(pred, target, *, max_tile_cols=None):
    """pred, target: [B, C, H, W] (any float dtype). Returns scalar f32 loss."""
    assert pred.shape == target.shape
    B = pred.shape[0]
    N = math.prod(pred.shape[1:])

    # Fold each sample into SUB rows so the sublane dimension is dense.
    SUB = 1
    for s in (8, 4, 2):
        if N % s == 0:
            SUB = s
            break
    R = B * SUB
    M = N // SUB
    p2 = pred.reshape(R, M)
    t2 = target.reshape(R, M)

    # Row tiling: split rows into two "parallel" tiles (megacore on v7x) when the
    # split keeps the sublane multiple-of-8 rule; otherwise one full-height tile.
    if R % 16 == 0:
        tile_r = R // 2
    else:
        tile_r = R
    n_r = R // tile_r

    # Column tiling: biggest multiple of 128 whose double-buffered footprint
    # (2 inputs x 2 buffers x tile_r x tile_m x native bytes) stays under ~12 MiB,
    # which fits the 32 MiB scoped VMEM limit on all of v5e/v6e/v7x with headroom.
    budget_bytes = 12 * 1024 * 1024
    denom = 2 * tile_r * (p2.dtype.itemsize + t2.dtype.itemsize)
    if M <= 128:
        tile_m = M
    else:
        max_cols = max(128, budget_bytes // denom)
        tile_m = min(M, (max_cols // 128) * 128)
    if max_tile_cols is not None:
        tile_m = min(tile_m, max_tile_cols)
    n_c = pl.cdiv(M, tile_m)
    needs_mask = (M % tile_m) != 0

    row_out = jax.ShapeDtypeStruct((R, 1), jnp.float32)
    kernel = partial(_soft_iou_sums_kernel,
                     tile_m=tile_m, m_total=M, needs_mask=needs_mask)

    inter, psum, tsum = pl.pallas_call(
        kernel,
        out_shape=(row_out, row_out, row_out),
        grid_spec=pltpu.PrefetchScalarGridSpec(
            num_scalar_prefetch=0,
            grid=(n_r, n_c),
            in_specs=[
                pl.BlockSpec((tile_r, tile_m), lambda r, c: (r, c)),
                pl.BlockSpec((tile_r, tile_m), lambda r, c: (r, c)),
            ],
            out_specs=[
                pl.BlockSpec((tile_r, 1), lambda r, c: (r, 0)),
                pl.BlockSpec((tile_r, 1), lambda r, c: (r, 0)),
                pl.BlockSpec((tile_r, 1), lambda r, c: (r, 0)),
            ],
        ),
        compiler_params=pltpu.CompilerParams(
            dimension_semantics=("parallel", "arbitrary"),
            vmem_limit_bytes=32 * 1024 * 1024,
        ),
    )(p2, t2)

    # Finalize (tiny): regroup the SUB folded rows back into per-sample sums,
    # then iou + mean.
    inter_s = inter.reshape(B, SUB).sum(axis=1)
    pred_s = psum.reshape(B, SUB).sum(axis=1)
    targ_s = tsum.reshape(B, SUB).sum(axis=1)

    smooth = jnp.float32(1.0)
    iou = (inter_s + smooth) / (pred_s + targ_s - inter_s + smooth)
    return jnp.float32(1.0) - jnp.mean(iou)


def _reference(pred, target):
    p = jax.nn.sigmoid(pred.astype(jnp.float32))
    t = target.astype(jnp.float32)
    smooth = 1.0
    inter = jnp.sum(p * t, axis=(1, 2, 3))
    psum = jnp.sum(p, axis=(1, 2, 3))
    tsum = jnp.sum(t, axis=(1, 2, 3))
    loss = (inter + smooth) / (psum + tsum - inter + smooth)
    return 1.0 - jnp.mean(loss)


if __name__ == "__main__":
    key = jax.random.PRNGKey(0)
    k1, k2, k3, k4 = jax.random.split(key, 4)

    # Case 1: standard NCHW shape (evenly tiled path).
    B, C, H, W = 2, 4, 16, 16
    pred = jax.random.normal(k1, (B, C, H, W), dtype=jnp.float32)
    target = (jax.random.uniform(k2, (B, C, H, W)) > 0.5).astype(jnp.float32)

    loss = jax.block_until_ready(soft_iou_loss(pred, target))
    ref = jax.block_until_ready(_reference(pred, target))
    assert jnp.allclose(loss, ref, atol=1e-5, rtol=1e-5), (loss, ref)

    # Case 2: ragged N — exercises the column grid and the masked tail tile.
    B2, C2, H2, W2 = 2, 3, 15, 15
    pred2 = jax.random.normal(k3, (B2, C2, H2, W2), dtype=jnp.float32)
    target2 = (jax.random.uniform(k4, (B2, C2, H2, W2)) > 0.5).astype(jnp.float32)

    loss2 = jax.block_until_ready(soft_iou_loss(pred2, target2, max_tile_cols=128))
    ref2 = jax.block_until_ready(_reference(pred2, target2))
    assert jnp.allclose(loss2, ref2, atol=1e-5, rtol=1e-5), (loss2, ref2)

    print("KERNEL_OK")
</pallas_src>

<mosaic_0001>
module attributes {stable_mosaic.version = 11 : i64} {
  func.func @_soft_iou_sums_kernel(%arg0: i32, %arg1: i32, %arg2: memref<8x128xf32, #tpu.memory_space<vmem>>, %arg3: memref<8x128xf32, #tpu.memory_space<vmem>>, %arg4: memref<8x1xf32, #tpu.memory_space<vmem>>, %arg5: memref<8x1xf32, #tpu.memory_space<vmem>>, %arg6: memref<8x1xf32, #tpu.memory_space<vmem>>) attributes {dimension_semantics = [#tpu.dimension_semantics<parallel>, #tpu.dimension_semantics<arbitrary>], iteration_bounds = array<i64: 2, 1>, scalar_prefetch = 0 : i64, scratch_operands = 0 : i64, tpu.core_type = #tpu.core_type<tc>, window_params = [{transform_indices = @transform_0, window_bounds = array<i64: 8, 128>}, {transform_indices = @transform_1, window_bounds = array<i64: 8, 128>}, {transform_indices = @transform_2, window_bounds = array<i64: 8, 1>}, {transform_indices = @transform_3, window_bounds = array<i64: 8, 1>}, {transform_indices = @transform_4, window_bounds = array<i64: 8, 1>}]} {
    %c0_i32 = arith.constant 0 : i32
    %0 = arith.cmpi eq, %arg1, %c0_i32 : i32
    %1 = arith.extui %0 : i1 to i32
    %c0_i32_0 = arith.constant 0 : i32
    %2 = arith.cmpi ne, %1, %c0_i32_0 : i32
    scf.if %2 {
      %cst_19 = arith.constant 0.000000e+00 : f32
      %26 = vector.broadcast %cst_19 : f32 to vector<8x1xf32>
      %c0_20 = arith.constant 0 : index
      %c0_21 = arith.constant 0 : index
      %27 = vector.load %arg4[%c0_20, %c0_21] : memref<8x1xf32, #tpu.memory_space<vmem>>, vector<8x1xf32>
      tpu.vector_store %arg4[%c0_20, %c0_21], %26 {strides = array<i32>} : memref<8x1xf32, #tpu.memory_space<vmem>>, vector<8x1xf32>,
      %cst_22 = arith.constant 0.000000e+00 : f32
      %28 = vector.broadcast %cst_22 : f32 to vector<8x1xf32>
      %c0_23 = arith.constant 0 : index
      %c0_24 = arith.constant 0 : index
      %29 = vector.load %arg5[%c0_23, %c0_24] : memref<8x1xf32, #tpu.memory_space<vmem>>, vector<8x1xf32>
      tpu.vector_store %arg5[%c0_23, %c0_24], %28 {strides = array<i32>} : memref<8x1xf32, #tpu.memory_space<vmem>>, vector<8x1xf32>,
      %cst_25 = arith.constant 0.000000e+00 : f32
      %30 = vector.broadcast %cst_25 : f32 to vector<8x1xf32>
      %c0_26 = arith.constant 0 : index
      %c0_27 = arith.constant 0 : index
      %31 = vector.load %arg6[%c0_26, %c0_27] : memref<8x1xf32, #tpu.memory_space<vmem>>, vector<8x1xf32>
      tpu.vector_store %arg6[%c0_26, %c0_27], %30 {strides = array<i32>} : memref<8x1xf32, #tpu.memory_space<vmem>>, vector<8x1xf32>,
    } else {
    }
    %c0 = arith.constant 0 : index
    %c0_1 = arith.constant 0 : index
    %3 = vector.load %arg2[%c0, %c0_1] : memref<8x128xf32, #tpu.memory_space<vmem>>, vector<8x128xf32>
    %4 = arith.negf %3 : vector<8x128xf32>
    %5 = math.exp %4 : vector<8x128xf32>
    %cst = arith.constant 1.000000e+00 : f32
    %6 = vector.broadcast %cst : f32 to vector<8x128xf32>
    %7 = arith.addf %6, %5 : vector<8x128xf32>
    %8 = arith.divf %6, %7 : vector<8x128xf32>
    %c0_2 = arith.constant 0 : index
    %c0_3 = arith.constant 0 : index
    %9 = vector.load %arg3[%c0_2, %c0_3] : memref<8x128xf32, #tpu.memory_space<vmem>>, vector<8x128xf32>
    %c0_4 = arith.constant 0 : index
    %c0_5 = arith.constant 0 : index
    %10 = vector.load %arg4[%c0_4, %c0_5] : memref<8x1xf32, #tpu.memory_space<vmem>>, vector<8x1xf32>
    %11 = arith.mulf %8, %9 : vector<8x128xf32>
    %cst_6 = arith.constant dense<0.000000e+00> : vector<8xf32>
    %12 = vector.multi_reduction <add>, %11, %cst_6 [1] : vector<8x128xf32> to vector<8xf32>
    %13 = vector.shape_cast %12 : vector<8xf32> to vector<8x1xf32>
    %14 = arith.addf %10, %13 : vector<8x1xf32>
    %c0_7 = arith.constant 0 : index
    %c0_8 = arith.constant 0 : index
    %15 = vector.load %arg4[%c0_7, %c0_8] : memref<8x1xf32, #tpu.memory_space<vmem>>, vector<8x1xf32>
    tpu.vector_store %arg4[%c0_7, %c0_8], %14 {strides = array<i32>} : memref<8x1xf32, #tpu.memory_space<vmem>>, vector<8x1xf32>,
    %c0_9 = arith.constant 0 : index
    %c0_10 = arith.constant 0 : index
    %16 = vector.load %arg5[%c0_9, %c0_10] : memref<8x1xf32, #tpu.memory_space<vmem>>, vector<8x1xf32>
    %cst_11 = arith.constant dense<0.000000e+00> : vector<8xf32>
    %17 = vector.multi_reduction <add>, %8, %cst_11 [1] : vector<8x128xf32> to vector<8xf32>
    %18 = vector.shape_cast %17 : vector<8xf32> to vector<8x1xf32>
    %19 = arith.addf %16, %18 : vector<8x1xf32>
    %c0_12 = arith.constant 0 : index
    %c0_13 = arith.constant 0 : index
    %20 = vector.load %arg5[%c0_12, %c0_13] : memref<8x1xf32, #tpu.memory_space<vmem>>, vector<8x1xf32>
    tpu.vector_store %arg5[%c0_12, %c0_13], %19 {strides = array<i32>} : memref<8x1xf32, #tpu.memory_space<vmem>>, vector<8x1xf32>,
    %c0_14 = arith.constant 0 : index
    %c0_15 = arith.constant 0 : index
    %21 = vector.load %arg6[%c0_14, %c0_15] : memref<8x1xf32, #tpu.memory_space<vmem>>, vector<8x1xf32>
    %cst_16 = arith.constant dense<0.000000e+00> : vector<8xf32>
    %22 = vector.multi_reduction <add>, %9, %cst_16 [1] : vector<8x128xf32> to vector<8xf32>
    %23 = vector.shape_cast %22 : vector<8xf32> to vector<8x1xf32>
    %24 = arith.addf %21, %23 : vector<8x1xf32>
    %c0_17 = arith.constant 0 : index
    %c0_18 = arith.constant 0 : index
    %25 = vector.load %arg6[%c0_17, %c0_18] : memref<8x1xf32, #tpu.memory_space<vmem>>, vector<8x1xf32>
    tpu.vector_store %arg6[%c0_17, %c0_18], %24 {strides = array<i32>} : memref<8x1xf32, #tpu.memory_space<vmem>>, vector<8x1xf32>,
    return
  }
  func.func @transform_0(%arg0: i32, %arg1: i32) -> (i32, i32) {
    %c0_i32 = arith.constant 0 : i32
    return %arg0, %arg1 : i32, i32
  }
  func.func @transform_1(%arg0: i32, %arg1: i32) -> (i32, i32) {
    %c0_i32 = arith.constant 0 : i32
    return %arg0, %arg1 : i32, i32
  }
  func.func @transform_2(%arg0: i32, %arg1: i32) -> (i32, i32) {
    %c0_i32 = arith.constant 0 : i32
    %c0_i32_0 = arith.constant 0 : i32
    return %arg0, %c0_i32 : i32, i32
  }
  func.func @transform_3(%arg0: i32, %arg1: i32) -> (i32, i32) {
    %c0_i32 = arith.constant 0 : i32
    %c0_i32_0 = arith.constant 0 : i32
    return %arg0, %c0_i32 : i32, i32
  }
  func.func @transform_4(%arg0: i32, %arg1: i32) -> (i32, i32) {
    %c0_i32 = arith.constant 0 : i32
    %c0_i32_0 = arith.constant 0 : i32
    return %arg0, %c0_i32 : i32, i32
  }
}

</mosaic_0001>

<bundles_post_ra>
// kernel: tpu_custom_call.1
= control target key start
LH: loop header
LB: loop body
LE: loop exit
PB: predicated region body
PF: predicated region fallthrough
CT: control target
= control target key end

     0   :  { %10 = vsyncpa [#allocation3], 0  ;;  %s892_s0 = inlined_call_operand.hbm [shape: f32[16,128], index: 0, kind: input, shape index: {}]   ;;  %s893_s1 = inlined_call_operand.hbm [shape: f32[16,128], index: 1, kind: input, shape index: {}]   ;;  %s894_s2 = inlined_call_operand.vmem [shape: f32[16,1], index: 2, kind: output, shape index: {0}]   ;;  %s895_s3 = inlined_call_operand.vmem [shape: f32[16,1], index: 3, kind: output, shape index: {1}]   ;;  %s896_s4 = inlined_call_operand.vmem [shape: f32[16,1], index: 4, kind: output, shape index: {2}]  }
   0x1   :  { %12 = vsyncpa [#allocation3 + $0x1], 0 }
   0x2   :  { %13 = vsyncpa [#allocation5], 0 }
   0x3   :  { %15 = vsyncpa [#allocation5 + $0x1], 0  ;;  %s708_s15 = smov 0   ;;  %s710_s16 = smov 0  }
   0x4   :  { %s712_s17 = smov 0   ;;  %s714_s18 = smov 0  }
   0x5   :  { %s716_s19 = smov 0   ;;  %s718_s20 = smov 0  }
   0x6 LB: > { %s482_s21 = sadd.s32 4294967295, %s678_s20   ;;  %s33_s22 = sadd.s32 1, %s674_s19  ;;  %s678_s20 = sphi %s718_s20, %s21_s20   ;;  %s674_s19 = sphi %s716_s19, %s910_s19   ;;  %s670_s18 = sphi %s714_s18, %s909_s18   ;;  %s666_s17 = sphi %s712_s17, %s908_s17   ;;  %s662_s16 = sphi %s710_s16, %s907_s16   ;;  %s658_s15 = sphi %s708_s15, %s906_s15  }
   0x7   : > { %p35_p0 = scmp.ge.s32.totalorder %s33_s22, 2  ;;  %s42_s23 = sadd.s32 1, %s666_s17 }
   0x8   : > { %p49_p1 = scmp.ne.s32.totalorder %s666_s17, %s662_s16  ;;  %p50_p2 = scmp.eq.s32.totalorder %s678_s20, 0 }
   0x9   : > { %s912_s22 = smov (%p35_p0, %s33_s22), 0  ;;  %p55_p4 = scmp.ne.s32.totalorder %s662_s16, %s658_s15 }
   0xa   : > { %p744_p3 = por %p50_p2, %p49_p1  ;;  %s37_s25 = ssub.s32 %s674_s19, %s912_s22 }
   0xb   : > { %p56_p5 = scmp.eq.s32.totalorder %s482_s21, 0  ;;  %p40_p6 = scmp.eq.s32.totalorder %s37_s25, 0 }
   0xc   : > { %p510_p8 = scmp.lt.s32.totalorder %s678_s20, 2  ;;  %s760_s28 = sand.u32 1, %s666_s17  }
   0xd   : > { %p751_p7 = por %p56_p5, %p55_p4  ;;  %s487_s29 = sshll.u32 %s674_s19, 7 }
   0xe   : > { %s757_s27 = scalar_select %p40_p6, %s666_s17, %s42_s23  }
   0xf   : > { %s899_s26 = scalar_select %p751_p7, 1, 0 }
  0x10   : > { %s486_s30 = sshll.u32 %s760_s28, 3  ;;  %s769_s7 = scalar_lea.hbm %s892_s0, %s487_s29 }
  0x11   : > { %s189_s8 = scalar_lea.vmem [#allocation2], %s486_s30  ;;  %p775_p9 = pnand %p510_p8, %p744_p3 }
  0x12   : > { %s197_s9 = sshll.u32 %s189_s8, 4  ;;  %s186_s11 = scalar_lea.sflag [#allocation3], %s760_s28  ;;  %s779_s9 = int_to_ptr.vmem [resolvable:$true] %s197_s9 }
  0x13   : > { %s564_s12 = scalar_lea.hbm %s769_s7, 128  ;;  %p566_p13 = pneg %p775_p9 }
  0x14   : > { %p565_p12 = scmp.ne.s32.totalorder %s769_s7, %s564_s12  ;;  %s569_s15 = scalar_lea.hbm %s892_s0, 256 }
  0x15   : > { %p570_p2 = scmp.lt.u32.totalorder %s769_s7, %s892_s0  ;;  %p571_p3 = scmp.lt.u32.totalorder %s569_s15, %s564_s12 }
  0x16   : > { %p567_p0 = pnand %p566_p13, %p565_p12  ;;  %p573_p5 = scmp.lt.u32.totalorder %s564_s12, %s769_s7 }
  0x17   : > { %p572_p4 = por %p571_p3, %p570_p2 }
  0x18   : > { %p568_p1 = pneg %p567_p0 }
  0x19   : > { %p574_p6 = por %p573_p5, %p572_p4 }
  0x1b   : > { %p575_p8 = pnand %p574_p6, %p568_p1 }
  0x1d   : > { %578 = shalt.err (!%p575_p8)
}
  0x1e   : > { %s579_s24 = scalar_lea.vmem %s779_s9, 128  ;;  %s680_s25 = smov [#allocation2]  }
  0x1f   : > { %p580_p12 = scmp.ne.s32.totalorder %s779_s9, %s579_s24  ;;  %s584_s5 = sshll.u32 %s680_s25, 4  ;;  %s585_s5 = int_to_ptr.vmem [resolvable:$false] %s584_s5 }
  0x20   : > { %s586_s6 = scalar_lea.vmem %s585_s5, 256  ;;  %p587_p11 = scmp.lt.s32.totalorder %s779_s9, %s585_s5 }
  0x21   : > { %p582_p0 = pnand %p580_p12, %p566_p13  ;;  %p588_p2 = scmp.lt.s32.totalorder %s586_s6, %s579_s24 }
  0x23   : > { %p583_p10 = pneg %p582_p0  ;;  %p589_p3 = por %p588_p2, %p587_p11 }
  0x25   : > { %p590_p4 = pnand %p589_p3, %p583_p10 }
  0x27   : > { %593 = shalt.err (!%p590_p4)
}
  0x28   : > { %506 = dma.hbm_to_vmem [thread:$0]  (!%p775_p9), %s769_s7, 128, %s779_s9, %s186_s11  }
  0x29   : > { %p901_p1 = scmp.lt.s32.totalorder %s678_s20, 3  ;;  %p902_p5 = scmp.ge.s32.totalorder %s678_s20, 1 }
  0x2a   : > { %s822_s14 = scalar_lea.hbm %s893_s1, %s487_s29  ;;  %s208_s15 = scalar_lea.vmem [#allocation4], %s486_s30 }
  0x2b   : > { %p813_p6 = pnand %p902_p5, %p901_p1  ;;  %s216_s21 = sshll.u32 %s208_s15, 4  ;;  %s217_s21 = int_to_ptr.vmem [resolvable:$true] %s216_s21 }
  0x2c   : > { %s205_s7 = scalar_lea.sflag [#allocation5], %s760_s28  ;;  %s594_s9 = scalar_lea.hbm %s822_s14, 128 }
  0x2d   : > { %s903_s8 = scalar_select %p813_p6, 1, 0 }
  0x2e   : > { %p595_p10 = scmp.ne.s32.totalorder %s822_s14, %s594_s9  ;;  %s599_s29 = scalar_lea.hbm %s893_s1, 256 }
  0x2f   : > { %p600_p12 = scmp.lt.u32.totalorder %s822_s14, %s893_s1  ;;  %p601_p0 = scmp.lt.u32.totalorder %s599_s29, %s594_s9 }
  0x30   : > { %p597_p11 = pnand %p595_p10, %p566_p13  ;;  %p603_p3 = scmp.lt.u32.totalorder %s594_s9, %s822_s14 }
  0x31   : > { %p602_p2 = por %p601_p0, %p600_p12 }
  0x32   : > { %p598_p8 = pneg %p597_p11 }
  0x33   : > { %p604_p4 = por %p603_p3, %p602_p2 }
  0x35   : > { %p605_p1 = pnand %p604_p4, %p598_p8 }
  0x37   : > { %608 = shalt.err (!%p605_p1)
}
  0x38   : > { %s609_s28 = scalar_lea.vmem %s217_s21, 128  ;;  %s681_s30 = smov [#allocation4]  }
  0x39   : > { %p610_p5 = scmp.ne.s32.totalorder %s217_s21, %s609_s28  ;;  %s614_s5 = sshll.u32 %s681_s30, 4  ;;  %s615_s5 = int_to_ptr.vmem [resolvable:$false] %s614_s5 }
  0x3a   : > { %s616_s6 = scalar_lea.vmem %s615_s5, 256  ;;  %p617_p7 = scmp.lt.s32.totalorder %s217_s21, %s615_s5 }
  0x3b   : > { %p612_p10 = pnand %p610_p5, %p566_p13  ;;  %p618_p6 = scmp.lt.s32.totalorder %s616_s6, %s609_s28 }
  0x3d   : > { %p613_p11 = pneg %p612_p10  ;;  %p619_p0 = por %p618_p6, %p617_p7 }
  0x3f   : > { %p620_p12 = pnand %p619_p0, %p613_p11 }
  0x41   : > { %623 = shalt.err (!%p620_p12)
}
  0x42   : > { %509 = dma.hbm_to_vmem [thread:$0]  (!%p775_p9), %s822_s14, 128, %s217_s21, %s205_s7  }
  0x43   : > { %p904_p8 = scmp.ne.s32.totalorder %s903_s8, 0 }
  0x44   : > { %s227_s12 = sand.u32 (!%p904_p8), 1, %s662_s16   ;;  %p905_p13 = scmp.ne.s32.totalorder (!%p904_p8), %s899_s26, 0 }
  0x45   : > { %225 = sbr.rel (%p904_p8) target bundleno = 257 (0x101), region = 28  ;;  %s491_s13 = sshll.u32 (!%p904_p8), %s227_s12, 3 }
  0x46   : > { %s228_s15 = scalar_lea.sflag (!%p904_p8), [#allocation3], %s227_s12  ;;  %s231_s9 = scalar_lea.vmem (!%p904_p8), [#allocation2], %s491_s13 }
  0x4c   : > { %649 = dma.done.wait (%p905_p13), %s228_s15, 128  }
  0x4d   : > { %651 = vsyncadd (%p905_p13), %s228_s15, 4294967168  ;;  %s237_s11 = scalar_lea.sflag [#allocation5], %s227_s12  ;;  %s240_s23 = scalar_lea.vmem [#allocation4], %s491_s13 }
  0x4e   : > { %653 = dma.done.wait (%p905_p13), %s237_s11, 128  }
  0x4f   : > { %655 = vsyncadd (%p905_p13), %s237_s11, 4294967168  ;;  %p277_p7 = scmp.lt.s32.totalorder %s670_s18, 1  ;;  %vm293_vm0 = vcmask 7168   ;;  %v682_v0 = vmov 0.0   ;;  %v297_v1 = vld [vmem:[%s231_s9] sm:$0xff]  ;;  %v304_v2 = vld [vmem:[%s240_s23] sm:$0xff] }
  0x50   : > { %v496_v3 = vmul.f32 -1.442695, %v297_v1  ;;  %318 = vadd.xlane.f32.xlu1 %v304_v2 }
  0x51   : > { %s914_s18 = smov (!%p277_p7, %s670_s18), 1 }
  0x52   : > { %s493_s10 = sshll.u32 %s914_s18, 3  ;;  %560 = vpow2.f32 %v496_v3 }
  0x53   : > { %s280_s21 = scalar_lea.vmem %s894_s2, %s493_s10  ;;  %s288_s7 = scalar_lea.vmem %s896_s4, %s493_s10 }
  0x54   : > { %294 = vst.msk [vmem:[%s280_s21] sm:$0xff] %vm293_vm0, %v682_v0  ;;  %s284_s25 = scalar_lea.vmem %s895_s3, %s493_s10  ;;  %296 = vst.msk [vmem:[%s288_s7] sm:$0xff] %vm293_vm0, %v682_v0 }
  0x55   : > { %295 = vst.msk [vmem:[%s284_s25] sm:$0xff] %vm293_vm0, %v682_v0 }
  0x5b   : > { %v317_v8 = vld [vmem:[%s288_s7] sm:$0xff] }
  0x5c   : > { %v561_v4 = vpop.eup %560  ;;  %v305_v11 = vld [vmem:[%s280_s21] sm:$0xff] }
  0x5d   : > { %v301_v5 = vadd.f32 1.0, %v561_v4  ;;  %v312_v14 = vld [vmem:[%s284_s25] sm:$0xff] }
  0x5f   : > { %562 = vrcp.f32 %v301_v5 }
  0x69   : > { %v563_v6 = vpop.eup %562 }
  0x6a   : > { %v306_v7 = vmul.f32 %v563_v6, %v304_v2 }
  0x6c   : > { %307 = vadd.xlane.f32.xlu0 %v306_v7 }
  0x70   : > { %313 = vadd.xlane.f32.xlu0 %v563_v6 }
  0xdd   : > { %v319_v9 = vpop.xlane.xlu1 %318 }
  0xde   : > { %v320_v10 = vadd.f32 %v319_v9, %v317_v8 }
  0xe0   : > { %321 = vst.msk [vmem:[%s288_s7] sm:$0xff] %vm293_vm0, %v320_v10 }
  0xf9   : > { %v308_v12 = vpop.xlane.xlu0 %307 }
  0xfa   : > { %v309_v13 = vadd.f32 %v308_v12, %v305_v11 }
  0xfc   : > { %311 = vst.msk [vmem:[%s280_s21] sm:$0xff] %vm293_vm0, %v309_v13 }
  0xfd   : > { %v314_v15 = vpop.xlane.xlu0 %313 }
  0xfe   : > { %v315_v16 = vadd.f32 %v314_v15, %v312_v14 }
 0x100   : > { %316 = vst.msk [vmem:[%s284_s25] sm:$0xff] %vm293_vm0, %v315_v16 }
 0x101 PF: > { %s21_s20 = sadd.s32 1, %s678_s20   ;;  %s906_s15 = smov %s662_s16 }
 0x102   : > { %p18_p9 = scmp.ge.s32.totalorder %s21_s20, 4   ;;  %s907_s16 = smov %s666_s17 }
 0x103   : > { %s908_s17 = smov %s757_s27  ;;  %s909_s18 = smov %s674_s19 }
 0x104   : > { %s910_s19 = smov %s912_s22  ;;  %20 = sbr.rel (!%p18_p9) target bundleno = 6 (0x6), region = 109 }
 0x10b   :  { %369 = vsyncpa [#allocation3], 1 }
 0x10c   :  { %371 = vsyncpa [#allocation3 + $0x1], 1 }
 0x10d   :  { %372 = vsyncpa [#allocation5], 1 }
 0x10e   :  { %374 = vsyncpa [#allocation5 + $0x1], 1 }

</bundles_post_ra>
